<compile_context>
chip_gen: v6e
topology: v6e:2x2x1
jax: 0.10.0
libtpu: 0.0.40
codegen_flags: <defaults>
</compile_context>

<pallas_src>
import jax
import jax.numpy as jnp
from jax.experimental import pallas as pl
from jax.experimental.pallas import tpu as pltpu

_LANE = 128
_SUBLANE = 8
_MAX_TILE_BYTES = 2 * 1024 * 1024  # per-operand tile budget (safe on v5e/v6e/v7x)
_MAX_LANES = 4096                  # target spatial tile width (multiple of 128)


def _pick_tiles(C, HW, itemsize):
    """Choose (TC, TN): channel-group and lane-dense spatial tile sizes."""
    # Spatial tile: largest multiple of 128 that divides HW, up to _MAX_LANES.
    if HW % _LANE == 0:
        tn = _LANE
        cap = min(HW, _MAX_LANES)
        t = _LANE
        while t <= cap:
            if HW % t == 0:
                tn = t
            t += _LANE
    else:
        tn = HW  # full-extent block is always legal (no 128 divisibility needed)

    # Channel tile: as many channels as fit the per-operand VMEM budget.
    max_tc = max(1, _MAX_TILE_BYTES // (tn * itemsize))
    if C <= max_tc:
        tc = C
    else:
        # Largest multiple-of-8 divisor of C that fits the budget.
        tc = 0
        t = _SUBLANE
        while t <= max_tc:
            if C % t == 0:
                tc = t
            t += _SUBLANE
        if tc == 0:
            # No 8-aligned divisor fits. Fall back to any divisor that fits if
            # it keeps the (8,128) rule (multiple of 8), else process the full
            # channel extent (always layout-legal).
            tc = C
    return tc, tn


def _noise_injection_kernel(w_ref, img_ref, noise_ref, out_ref):
    # w_ref:    (1,) f32 scalar-prefetched into SMEM
    # img_ref:  (1, TC, TN) VMEM tile of the flattened image
    # noise_ref:(1, 1, TN)  VMEM tile of the flattened noise (bcast over TC)
    # out_ref:  (1, TC, TN) VMEM output tile
    out_ref[...] = (img_ref[...] + w_ref[0] * noise_ref[...]).astype(out_ref.dtype)


def noise_injection(image, weight, noise=None):
    """image: (B, C, H, W); weight: (1,) or scalar; noise: (B, 1, H, W) or None."""
    B, C, H, W = image.shape
    if noise is None:
        # Reference semantics: noise = zeros(B,1,H,W)  =>  out == image.
        # Avoid materializing + streaming a zero tensor through HBM.
        return image

    HW = H * W
    itemsize = jnp.dtype(image.dtype).itemsize
    tc, tn = _pick_tiles(C, HW, itemsize)
    gn = HW // tn
    gc = pl.cdiv(C, tc)

    img3 = image.reshape(B, C, HW)
    noise3 = noise.astype(image.dtype).reshape(B, 1, HW)
    weight = jnp.asarray(weight, dtype=jnp.float32).reshape((1,))

    grid_spec = pltpu.PrefetchScalarGridSpec(
        num_scalar_prefetch=1,                 # weight -> SMEM
        grid=(B, gn, gc),                      # channel innermost: noise DMA deduped
        in_specs=[
            # image tile: (1, TC, TN)
            pl.BlockSpec((1, tc, tn), lambda b, n, c, w: (b, c, n)),
            # noise tile: (1, 1, TN) — block index constant across innermost c axis,
            # so its DMA is elided for all but the first channel group per (b, n).
            pl.BlockSpec((1, 1, tn), lambda b, n, c, w: (b, 0, n)),
        ],
        out_specs=pl.BlockSpec((1, tc, tn), lambda b, n, c, w: (b, c, n)),
    )

    out3 = pl.pallas_call(
        _noise_injection_kernel,
        out_shape=jax.ShapeDtypeStruct((B, C, HW), image.dtype),
        grid_spec=grid_spec,
        compiler_params=pltpu.CompilerParams(
            dimension_semantics=("parallel", "parallel", "parallel"),
            vmem_limit_bytes=64 * 1024 * 1024,
        ),
        cost_estimate=pl.CostEstimate(
            flops=2 * B * C * HW,
            transcendentals=0,
            # image read + output write + noise read once per batch
            bytes_accessed=(2 * B * C * HW + B * HW) * itemsize,
        ),
    )(weight, img3, noise3)

    return out3.reshape(B, C, H, W)


if __name__ == "__main__":
    key = jax.random.PRNGKey(0)
    k_img, k_noise = jax.random.split(key)

    B, C, H, W = 2, 4, 16, 16
    image = jax.random.normal(k_img, (B, C, H, W), dtype=jnp.float32)
    noise = jax.random.normal(k_noise, (B, 1, H, W), dtype=jnp.float32)

    # Deterministic parameter values.
    weight_init = jnp.zeros((1,), dtype=jnp.float32)       # nn.Parameter(torch.zeros(1))
    weight_test = jnp.full((1,), 0.5, dtype=jnp.float32)   # nontrivial check

    # Default path (noise=None -> zeros in this module): output == input.
    out_default = noise_injection(image, weight_test)
    jax.block_until_ready(out_default)
    assert jnp.allclose(out_default, image), "default (zero-noise) path mismatch"

    # Zero-weight path with explicit noise: output == input.
    out_zero_w = noise_injection(image, weight_init, noise)
    jax.block_until_ready(out_zero_w)
    assert jnp.allclose(out_zero_w, image, atol=1e-6), "zero-weight mismatch"

    # Explicit-noise path against a pure-JAX reference.
    out = noise_injection(image, weight_test, noise)
    jax.block_until_ready(out)
    ref = image + weight_test[0] * noise  # noise broadcasts over channel axis
    assert jnp.allclose(out, ref, atol=1e-6), "noise-injection mismatch vs reference"

    print("KERNEL_OK")
</pallas_src>

<mosaic_0001>
module attributes {stable_mosaic.version = 11 : i64} {
  func.func @_noise_injection_kernel(%arg0: i32, %arg1: i32, %arg2: i32, %arg3: memref<1xf32, #tpu.memory_space<smem>>, %arg4: memref<1x4x256xf32, #tpu.memory_space<vmem>>, %arg5: memref<1x1x256xf32, #tpu.memory_space<vmem>>, %arg6: memref<1x4x256xf32, #tpu.memory_space<vmem>>) attributes {dimension_semantics = [#tpu.dimension_semantics<parallel>, #tpu.dimension_semantics<parallel>, #tpu.dimension_semantics<parallel>], iteration_bounds = array<i64: 2, 1, 1>, scalar_prefetch = 1 : i64, scratch_operands = 0 : i64, tpu.core_type = #tpu.core_type<tc>, window_params = [{transform_indices = @transform_0, window_bounds = array<i64: 1, 4, 256>}, {transform_indices = @transform_1, window_bounds = array<i64: 1, 1, 256>}, {transform_indices = @transform_2, window_bounds = array<i64: 1, 4, 256>}]} {
    %c0 = arith.constant 0 : index
    %c0_0 = arith.constant 0 : index
    %c0_1 = arith.constant 0 : index
    %0 = vector.load %arg4[%c0, %c0_0, %c0_1] : memref<1x4x256xf32, #tpu.memory_space<vmem>>, vector<1x4x256xf32>
    %c0_2 = arith.constant 0 : index
    %1 = memref.load %arg3[%c0_2] : memref<1xf32, #tpu.memory_space<smem>>
    %c0_3 = arith.constant 0 : index
    %c0_4 = arith.constant 0 : index
    %c0_5 = arith.constant 0 : index
    %2 = vector.load %arg5[%c0_3, %c0_4, %c0_5] : memref<1x1x256xf32, #tpu.memory_space<vmem>>, vector<1x1x256xf32>
    %3 = vector.broadcast %1 : f32 to vector<1x1x256xf32>
    %4 = arith.mulf %3, %2 : vector<1x1x256xf32>
    %5 = vector.broadcast %4 : vector<1x1x256xf32> to vector<1x4x256xf32>
    %6 = arith.addf %0, %5 : vector<1x4x256xf32>
    %c0_6 = arith.constant 0 : index
    %c0_7 = arith.constant 0 : index
    %c0_8 = arith.constant 0 : index
    %7 = vector.load %arg6[%c0_6, %c0_7, %c0_8] : memref<1x4x256xf32, #tpu.memory_space<vmem>>, vector<1x4x256xf32>
    tpu.vector_store %arg6[%c0_6, %c0_7, %c0_8], %6 {strides = array<i32>} : memref<1x4x256xf32, #tpu.memory_space<vmem>>, vector<1x4x256xf32>,
    return
  }
  func.func @transform_0(%arg0: i32, %arg1: i32, %arg2: i32, %arg3: memref<1xf32, #tpu.memory_space<smem>>) -> (i32, i32, i32) {
    %c0_i32 = arith.constant 0 : i32
    return %arg0, %arg2, %arg1 : i32, i32, i32
  }
  func.func @transform_1(%arg0: i32, %arg1: i32, %arg2: i32, %arg3: memref<1xf32, #tpu.memory_space<smem>>) -> (i32, i32, i32) {
    %c0_i32 = arith.constant 0 : i32
    %c0_i32_0 = arith.constant 0 : i32
    return %arg0, %c0_i32, %arg1 : i32, i32, i32
  }
  func.func @transform_2(%arg0: i32, %arg1: i32, %arg2: i32, %arg3: memref<1xf32, #tpu.memory_space<smem>>) -> (i32, i32, i32) {
    %c0_i32 = arith.constant 0 : i32
    return %arg0, %arg2, %arg1 : i32, i32, i32
  }
}

</mosaic_0001>

<bundles_post_ra>
// kernel: tpu_custom_call.1
= control target key start
LH: loop header
LB: loop body
LE: loop exit
PB: predicated region body
PF: predicated region fallthrough
CT: control target
= control target key end

     0   :  { %s813_s0 = inlined_call_operand.<no memory space> [shape: f32[1], index: 0, kind: input, shape index: {}]   ;;  %s814_s1 = inlined_call_operand.hbm [shape: f32[2,4,256], index: 1, kind: input, shape index: {}]   ;;  %s815_s2 = inlined_call_operand.hbm [shape: f32[2,1,256], index: 2, kind: input, shape index: {}]   ;;  %s816_s3 = inlined_call_operand.hbm [shape: f32[2,4,256], index: 3, kind: output, shape index: {}]  }
   0x1   :  { %8 = sst [smem:[#allocation3]] %s813_s0 }
   0x2   :  { %9 = vsyncpa [#allocation5], 0 }
   0x3   :  { %11 = vsyncpa [#allocation5 + $0x1], 0 }
   0x4   :  { %12 = vsyncpa [#allocation8], 0 }
   0x5   :  { %14 = vsyncpa [#allocation8 + $0x1], 0 }
   0x6   :  { %15 = vsyncpa [#allocation6], 0 }
   0x7   :  { %17 = vsyncpa [#allocation6 + $0x1], 0  ;;  %s649_s14 = smov 0   ;;  %s651_s15 = smov 0  }
   0x8   :  { %s653_s16 = smov 0   ;;  %s655_s17 = smov 0  }
   0x9   :  { %s657_s18 = smov 0   ;;  %s659_s19 = smov 0  }
   0xa LB: > { %s392_s0 = sadd.s32 4294967295, %s621_s19   ;;  %s393_s20 = sadd.s32 4294967294, %s621_s19   ;;  %s621_s19 = sphi %s659_s19, %s23_s19   ;;  %s617_s18 = sphi %s657_s18, %s828_s18   ;;  %s613_s17 = sphi %s655_s17, %s827_s17   ;;  %s609_s16 = sphi %s653_s16, %s826_s16   ;;  %s605_s15 = sphi %s651_s15, %s825_s15   ;;  %s601_s14 = sphi %s649_s14, %s824_s14  }
   0xb   : > { %s42_s21 = sadd.s32 1, %s617_s18  ;;  %s53_s22 = sadd.s32 1, %s609_s16 }
   0xc   : > { %p44_p0 = scmp.ge.s32.totalorder %s42_s21, 2  ;;  %p60_p1 = scmp.ne.s32.totalorder %s609_s16, %s605_s15 }
   0xd   : > { %p61_p2 = scmp.eq.s32.totalorder %s621_s19, 0  ;;  %p66_p3 = scmp.ne.s32.totalorder %s605_s15, %s601_s14 }
   0xe   : > { %s830_s21 = smov (%p44_p0, %s42_s21), 0  ;;  %p67_p5 = scmp.eq.s32.totalorder %s392_s0, 0 }
   0xf   : > { %p690_p4 = por %p61_p2, %p60_p1  ;;  %s46_s24 = ssub.s32 %s617_s18, %s830_s21 }
  0x10   : > { %p122_p6 = scmp.eq.s32.totalorder %s392_s0, 1  ;;  %p51_p7 = scmp.eq.s32.totalorder %s46_s24, 0 }
  0x11   : > { %p696_p8 = por %p67_p5, %p66_p3  ;;  %p128_p10 = scmp.eq.s32.totalorder %s393_s20, 1 }
  0x12   : > { %p700_p9 = por %p122_p6, %p60_p1  ;;  %p431_p13 = scmp.lt.s32.totalorder %s621_s19, 2 }
  0x13   : > { %s705_s27 = scalar_select %p51_p7, %s609_s16, %s53_s22  }
  0x14   : > { %p707_p11 = por %p128_p10, %p66_p3  ;;  %s714_s29 = sand.u32 1, %s609_s16  }
  0x15   : > { %s396_s30 = sshll.u32 %s714_s29, 3  ;;  %s411_s4 = sshll.u32 %s617_s18, 7 }
  0x16   : > { %s162_s7 = scalar_lea.hbm %s814_s1, %s411_s4  ;;  %s152_s8 = scalar_lea.vmem [#allocation4], %s396_s30 }
  0x17   : > { %s164_s9 = sshll.u32 %s152_s8, 4  ;;  %p723_p0 = pnand %p431_p13, %p690_p4  ;;  %s165_s9 = int_to_ptr.vmem [resolvable:$true] %s164_s9 }
  0x18   : > { %p402_p1 = scmp.ge.s32.totalorder %s621_s19, 1  ;;  %p190_p2 = scmp.lt.s32.totalorder %s621_s19, 3 }
  0x19   : > { %s149_s11 = scalar_lea.sflag [#allocation5], %s714_s29  ;;  %p483_p3 = pneg %p723_p0 }
  0x1a   : > { %s494_s12 = scalar_lea.vmem %s165_s9, 128  ;;  %s623_s13 = smov [#allocation4]  }
  0x1b   : > { %p495_p5 = scmp.ne.s32.totalorder %s165_s9, %s494_s12  ;;  %s499_s0 = sshll.u32 %s623_s13, 4  ;;  %s500_s0 = int_to_ptr.vmem [resolvable:$false] %s499_s0 }
  0x1c   : > { %s501_s20 = scalar_lea.vmem %s500_s0, 256  ;;  %p502_p4 = scmp.lt.s32.totalorder %s165_s9, %s500_s0 }
  0x1d   : > { %p497_p6 = pnand %p495_p5, %p483_p3  ;;  %p503_p10 = scmp.lt.s32.totalorder %s501_s20, %s494_s12 }
  0x1f   : > { %p498_p7 = pneg %p497_p6  ;;  %p504_p13 = por %p503_p10, %p502_p4 }
  0x21   : > { %p505_p12 = pnand %p504_p13, %p498_p7 }
  0x23   : > { %508 = shalt.err (!%p505_p12)
}
  0x24   : > { %423 = dma.hbm_to_vmem [thread:$0]  (!%p723_p0), %s162_s7, 128, %s165_s9, %s149_s11  }
  0x25   : > { %p741_p5 = pnand %p402_p1, %p190_p2  ;;  %s399_s23 = sshll.u32 %s714_s29, 1 }
  0x26   : > { %s412_s24 = sshll.u32 %s617_s18, 5  ;;  %s175_s6 = scalar_lea.vmem [#allocation7], %s399_s23 }
  0x27   : > { %s183_s5 = scalar_lea.hbm %s815_s2, %s412_s24  ;;  %s185_s8 = sshll.u32 %s175_s6, 4  ;;  %s186_s8 = int_to_ptr.vmem [resolvable:$true] %s185_s8 }
  0x28   : > { %s172_s12 = scalar_lea.sflag [#allocation8], %s714_s29  ;;  %s522_s13 = scalar_lea.vmem %s186_s8, 32 }
  0x29   : > { %p523_p12 = scmp.ne.s32.totalorder %s186_s8, %s522_s13  ;;  %s624_s7 = smov [#allocation7]  }
  0x2a   : > { %s527_s9 = sshll.u32 %s624_s7, 4  ;;  %s528_s9 = int_to_ptr.vmem [resolvable:$false] %s527_s9 }
  0x2b   : > { %p525_p6 = pnand %p523_p12, %p483_p3  ;;  %s529_s11 = scalar_lea.vmem %s528_s9, 64 }
  0x2c   : > { %p530_p1 = scmp.lt.s32.totalorder %s186_s8, %s528_s9  ;;  %p531_p2 = scmp.lt.s32.totalorder %s529_s11, %s522_s13 }
  0x2d   : > { %p526_p7 = pneg %p525_p6 }
  0x2e   : > { %p532_p4 = por %p531_p2, %p530_p1 }
  0x30   : > { %p533_p10 = pnand %p532_p4, %p526_p7 }
  0x32   : > { %536 = shalt.err (!%p533_p10)
}
  0x33   : > { %426 = dma.hbm_to_vmem [thread:$0]  (!%p723_p0), %s183_s5, 32, %s186_s8, %s172_s12  }
  0x34   : > { %194 = sbr.rel (%p741_p5) target bundleno = 89 (0x59), region = 28  ;;  %s759_s29 = sand.u32 (!%p741_p5), 1, %s605_s15  }
  0x35   : > { %s403_s0 = sshll.u32 (!%p741_p5), %s759_s29, 3  ;;  %s197_s20 = scalar_lea.sflag (!%p741_p5), [#allocation5], %s759_s29 }
  0x36   : > { %s200_s23 = scalar_lea.vmem (!%p741_p5), [#allocation4], %s403_s0 }
  0x39   : > { %588 = dma.done.wait (%p696_p8), %s197_s20, 128  }
  0x3a   : > { %590 = vsyncadd (%p696_p8), %s197_s20, 4294967168  ;;  %s404_s10 = sshll.u32 %s759_s29, 1  ;;  %s206_s22 = scalar_lea.sflag [#allocation8], %s759_s29 }
  0x3b   : > { %s209_s24 = scalar_lea.vmem [#allocation7], %s404_s10 }
  0x3c   : > { %592 = dma.done.wait (%p696_p8), %s206_s22, 32  }
  0x3d   : > { %594 = vsyncadd (%p696_p8), %s206_s22, 4294967264  ;;  %v244_v0 = vlaneseq  ;;  %s239_s30 = sld [smem:[#allocation3]]  ;;  %v240_v4 = vld [vmem:[%s209_s24] sm:$0x3]  ;;  %v238_v9 = vld [vmem:[%s200_s23] sm:$0xff]  ;;  %s234_s4 = scalar_lea.vmem [#allocation9], %s403_s0 }
  0x3e   : > { %s275_s5 = sshll.u32 %s234_s4, 4  ;;  %s413_s6 = sshll.u32 %s613_s17, 7  ;;  %s276_s5 = int_to_ptr.vmem [resolvable:$true] %s275_s5 }
  0x3f   : > { %v245_v1 = vshrl.u32 %v244_v0, 7  ;;  %s273_s12 = scalar_lea.hbm %s816_s3, %s413_s6  ;;  %s257_s13 = scalar_lea.sflag [#allocation6], %s759_s29 }
  0x40   : > { %s537_s7 = scalar_lea.vmem %s276_s5, 128  ;;  %s625_s9 = smov [#allocation9]  }
  0x41   : > { %v246_v2 = vsub.s32 0, %v245_v1  ;;  %v250_v3 = vsub.s32 1, %v245_v1  ;;  %p538_p8 = scmp.ne.s32.totalorder %s276_s5, %s537_s7  ;;  %s541_s11 = sshll.u32 %s625_s9, 4  ;;  %s542_s11 = int_to_ptr.vmem [resolvable:$false] %s541_s11 }
  0x42   : > { %s543_s0 = scalar_lea.vmem %s542_s11, 256  ;;  %p544_p13 = scmp.lt.s32.totalorder %s276_s5, %s542_s11 }
  0x43   : > { %v241_v5 = vstv %s239_s30  ;;  %p539_p0 = pnand %p538_p8, %p700_p9  ;;  %p545_p5 = scmp.lt.s32.totalorder %s543_s0, %s537_s7 }
  0x44   : > { %v242_v6 = vmul.f32 %v241_v5, %v240_v4 }
  0x45   : > { %p540_p3 = pneg %p539_p0  ;;  %p546_p12 = por %p545_p5, %p544_p13 }
  0x46   : > { %v247_v7 = vrot.slane %v242_v6, %v246_v2  ;;  %v251_v8 = vrot.slane %v242_v6, %v250_v3 }
  0x47   : > { %p547_p6 = pnand %p546_p12, %p540_p3 }
  0x48   : > { %v252_v10 = vcombine.low %v247_v7, %v251_v8 }
  0x4a   : > { %v254_v11 = vadd.f32 %v252_v10, %v238_v9 }
  0x4c   : > { %255 = vst [vmem:[%s234_s4] sm:$0xff] %v254_v11 }
  0x4d   : > { %550 = shalt.err (!%p547_p6)
}
  0x4e   : > { %s551_s17 = scalar_lea.hbm %s273_s12, 128  ;;  %s555_s23 = scalar_lea.hbm %s816_s3, 256 }
  0x4f   : > { %p552_p7 = scmp.ne.s32.totalorder %s273_s12, %s551_s17  ;;  %p556_p4 = scmp.lt.s32.totalorder %s273_s12, %s816_s3 }
  0x50   : > { %p557_p10 = scmp.lt.s32.totalorder %s555_s23, %s551_s17 }
  0x51   : > { %p553_p1 = pnand %p552_p7, %p700_p9 }
  0x52   : > { %p558_p8 = por %p557_p10, %p556_p4 }
  0x53   : > { %p554_p2 = pneg %p553_p1 }
  0x55   : > { %p559_p0 = pnand %p558_p8, %p554_p2 }
  0x57   : > { %562 = shalt.err (!%p559_p0)
}
  0x58   : > { %418 = dma.vmem_to_hbm [thread:$0]  (%p700_p9), %s276_s5, 128, %s273_s12, %s257_s13  }
  0x59 PF: > { %s287_s24 = sand.u32 1, %s601_s14   ;;  %p823_p3 = scmp.ge.s32.totalorder %s621_s19, 2 }
  0x5a   : > { %s288_s30 = scalar_lea.sflag [#allocation6], %s287_s24 }
  0x5b   : > { %p428_p13 = pnand %p823_p3, %p707_p11 }
  0x5d   : > { %p429_p5 = pneg %p428_p13 }
  0x5f   : > { %596 = dma.done.wait (%p429_p5), %s288_s30, 128  }
  0x60   : > { %598 = vsyncadd (%p429_p5), %s288_s30, 4294967168  ;;  %s23_s19 = sadd.s32 1, %s621_s19   ;;  %s824_s14 = smov %s605_s15 }
  0x61   : > { %p20_p12 = scmp.ge.s32.totalorder %s23_s19, 4   ;;  %s825_s15 = smov %s609_s16 }
  0x62   : > { %s826_s16 = smov %s705_s27  ;;  %s827_s17 = smov %s617_s18 }
  0x63   : > { %s828_s18 = smov %s830_s21  ;;  %22 = sbr.rel (!%p20_p12) target bundleno = 10 (0xa), region = 86 }
  0x68   :  { %293 = vsyncpa [#allocation5], 1 }
  0x69   :  { %295 = vsyncpa [#allocation5 + $0x1], 1 }
  0x6a   :  { %296 = vsyncpa [#allocation8], 1 }
  0x6b   :  { %298 = vsyncpa [#allocation8 + $0x1], 1 }
  0x6c   :  { %299 = vsyncpa [#allocation6], 1 }
  0x6d   :  { %301 = vsyncpa [#allocation6 + $0x1], 1 }

</bundles_post_ra>
